<compile_context>
chip_gen: v7x
topology: tpu7x:2x2x1
jax: 0.10.0
libtpu: 0.0.40
codegen_flags: <defaults>
</compile_context>

<pallas_src>
import functools

import jax
import jax.numpy as jnp
import numpy as np
from jax.experimental import pallas as pl
from jax.experimental.pallas import tpu as pltpu

HIDDEN = 128
LANES = 128  # lane width / padded action dimension for compute


def pdactor_kernel(obs_ref, w1_ref, b1_ref, w2_ref, b2_ref, out_ref, *, a_dim):
    # obs_ref: (TB, obs_dim)   w1_ref: (obs_dim, H)   b1_ref: (1, H)
    # w2_ref:  (H, A_pad)      b2_ref: (1, A_pad)     out_ref: (TB, a_dim)
    obs = obs_ref[...]
    b1 = b1_ref[...]
    b2 = b2_ref[...]

    # fc1 + tanh  (MXU matmul, f32 accumulate; tanh on EUP)
    h = jnp.tanh(jnp.dot(obs, w1_ref[...],
                         preferred_element_type=jnp.float32) + b1)      # (TB, H)

    # fc2 on the lane-dense padded action axis (pad bias = -1e30)
    logits = jnp.dot(h, w2_ref[...],
                     preferred_element_type=jnp.float32) + b2           # (TB, A_pad)

    # Numerically stable softmax; padded lanes have logits ~ -1e30 -> exp == 0,
    # so normalization is exactly softmax over the real action_dim columns.
    m = jnp.max(logits, axis=-1, keepdims=True)
    e = jnp.exp(logits - m)
    denom = jnp.sum(e, axis=-1, keepdims=True)
    probs = e / denom                               # exact; operand is (TB, 1)

    # Store only the real action columns (masked lane stores, negligible cost;
    # avoids writing 128 padded f32 lanes per row to HBM).
    out_ref[...] = probs[:, :a_dim].astype(out_ref.dtype)


def pdactor_forward(obs, w1, b1, w2, b2, *, block_b=4096):
    """obs: (B, obs_dim) f32. w1: (obs_dim, H), b1: (1, H), w2: (H, A), b2: (1, A).

    Returns softmax(tanh(obs @ w1 + b1) @ w2 + b2, axis=1) with shape (B, A).
    """
    B, obs_dim = obs.shape
    H = w1.shape[1]
    A = w2.shape[1]

    # --- lane-dense padding of the action dimension (compute only) ---
    A_pad = max(LANES, ((A + LANES - 1) // LANES) * LANES)
    if A_pad != A:
        w2p = jnp.zeros((H, A_pad), jnp.float32).at[:, :A].set(w2)
        # pad bias very negative so padded lanes vanish in the softmax
        b2p = jnp.full((1, A_pad), -1e30, dtype=jnp.float32).at[:, :A].set(b2)
    else:
        w2p, b2p = w2, b2

    # --- batch tiling: TB multiple of 8, large enough to amortize per-step
    #     overhead, but capped so there are >= 2 grid steps (v7x megacore) ---
    B8 = ((B + 7) // 8) * 8
    TB = min(block_b, B8)
    if B8 >= 16:
        half = ((-(-B8 // 2)) + 7) // 8 * 8          # ceil(B8/2) rounded up to 8
        TB = min(TB, half)
    TB = max(8, (TB // 8) * 8)
    num_tiles = -(-B8 // TB)
    B_pad = num_tiles * TB
    if B_pad != B:
        obs_p = jnp.zeros((B_pad, obs_dim), obs.dtype).at[:B, :].set(obs)
    else:
        obs_p = obs

    cost = pl.CostEstimate(
        flops=2 * B_pad * (obs_dim * H + H * A_pad),
        transcendentals=B_pad * (H + A_pad),
        bytes_accessed=4 * (B_pad * obs_dim + obs_dim * H + H
                            + H * A_pad + A_pad + B_pad * A),
    )

    out = pl.pallas_call(
        functools.partial(pdactor_kernel, a_dim=A),
        out_shape=jax.ShapeDtypeStruct((B_pad, A), jnp.float32),
        grid=(num_tiles,),
        in_specs=[
            pl.BlockSpec((TB, obs_dim), lambda i: (i, 0)),   # obs tile: pipelined
            pl.BlockSpec((obs_dim, H), lambda i: (0, 0)),    # w1: VMEM-resident
            pl.BlockSpec((1, H), lambda i: (0, 0)),          # b1: VMEM-resident
            pl.BlockSpec((H, A_pad), lambda i: (0, 0)),      # w2 (padded)
            pl.BlockSpec((1, A_pad), lambda i: (0, 0)),      # b2 (padded)
        ],
        out_specs=pl.BlockSpec((TB, A), lambda i: (i, 0)),   # narrow store
        compiler_params=pltpu.CompilerParams(
            dimension_semantics=("parallel",),               # megacore sharding
            vmem_limit_bytes=32 * 1024 * 1024,
        ),
        cost_estimate=cost,
    )(obs_p, w1, b1, w2p, b2p)

    # only the batch padding (if any) needs slicing away; A is already exact
    return out if B_pad == B else out[:B]


def init_linear(key, in_features, out_features):
    """PyTorch-style nn.Linear init: U(-1/sqrt(in), 1/sqrt(in)).

    Weight returned transposed as (in_features, out_features); bias as (1, out).
    """
    kw, kb = jax.random.split(key)
    bound = 1.0 / np.sqrt(in_features)
    w = jax.random.uniform(kw, (in_features, out_features),
                           minval=-bound, maxval=bound, dtype=jnp.float32)
    b = jax.random.uniform(kb, (1, out_features),
                           minval=-bound, maxval=bound, dtype=jnp.float32)
    return w, b


if __name__ == "__main__":
    obs_dim = 8
    action_dim = 4
    batch = 2

    key = jax.random.PRNGKey(0)
    k_obs, k_fc1, k_fc2 = jax.random.split(key, 3)

    obs = jax.random.normal(k_obs, (batch, obs_dim), dtype=jnp.float32)
    w1, b1 = init_linear(k_fc1, obs_dim, HIDDEN)
    w2, b2 = init_linear(k_fc2, HIDDEN, action_dim)

    out = pdactor_forward(obs, w1, b1, w2, b2)
    out = jax.block_until_ready(out)

    # Reference check in plain JAX (same math as the PyTorch module).
    ref = jax.nn.softmax(jnp.tanh(obs @ w1 + b1) @ w2 + b2, axis=1)
    np.testing.assert_allclose(np.asarray(out), np.asarray(ref),
                               rtol=1e-4, atol=1e-6)
    assert out.shape == (batch, action_dim)
    # exact reciprocal -> rows sum to 1 to f32 precision
    np.testing.assert_allclose(np.asarray(out).sum(axis=1),
                               np.ones(batch), rtol=1e-5, atol=1e-5)

    print("KERNEL_OK")
</pallas_src>

<mosaic_0001>
module attributes {stable_mosaic.version = 11 : i64} {
  func.func @pdactor_kernel(%arg0: i32, %arg1: memref<8x8xf32, #tpu.memory_space<vmem>>, %arg2: memref<8x128xf32, #tpu.memory_space<vmem>>, %arg3: memref<1x128xf32, #tpu.memory_space<vmem>>, %arg4: memref<128x128xf32, #tpu.memory_space<vmem>>, %arg5: memref<1x128xf32, #tpu.memory_space<vmem>>, %arg6: memref<8x4xf32, #tpu.memory_space<vmem>>) attributes {dimension_semantics = [#tpu.dimension_semantics<parallel>], iteration_bounds = array<i64: 1>, scalar_prefetch = 0 : i64, scratch_operands = 0 : i64, tpu.core_type = #tpu.core_type<tc>, window_params = [{transform_indices = @transform_0, window_bounds = array<i64: 8, 8>}, {pipeline_mode = #tpu.pipeline_mode<synchronous>, transform_indices = @transform_1, window_bounds = array<i64: 8, 128>}, {pipeline_mode = #tpu.pipeline_mode<synchronous>, transform_indices = @transform_2, window_bounds = array<i64: 1, 128>}, {pipeline_mode = #tpu.pipeline_mode<synchronous>, transform_indices = @transform_3, window_bounds = array<i64: 128, 128>}, {pipeline_mode = #tpu.pipeline_mode<synchronous>, transform_indices = @transform_4, window_bounds = array<i64: 1, 128>}, {transform_indices = @transform_5, window_bounds = array<i64: 8, 4>}]} {
    %c0 = arith.constant 0 : index
    %c0_0 = arith.constant 0 : index
    %0 = vector.load %arg1[%c0, %c0_0] : memref<8x8xf32, #tpu.memory_space<vmem>>, vector<8x8xf32>
    %c0_1 = arith.constant 0 : index
    %c0_2 = arith.constant 0 : index
    %1 = vector.load %arg3[%c0_1, %c0_2] : memref<1x128xf32, #tpu.memory_space<vmem>>, vector<1x128xf32>
    %c0_3 = arith.constant 0 : index
    %c0_4 = arith.constant 0 : index
    %2 = vector.load %arg5[%c0_3, %c0_4] : memref<1x128xf32, #tpu.memory_space<vmem>>, vector<1x128xf32>
    %c0_5 = arith.constant 0 : index
    %c0_6 = arith.constant 0 : index
    %3 = vector.load %arg2[%c0_5, %c0_6] : memref<8x128xf32, #tpu.memory_space<vmem>>, vector<8x128xf32>
    %cst = arith.constant dense<0.000000e+00> : vector<8x128xf32>
    %4 = tpu.matmul %0, %3, %cst {dimension_numbers = #tpu.dot_dimension_numbers<[1], [0], [0], [1], [0, 0, 1, 1], [], []>} : vector<8x8xf32>, vector<8x128xf32>, vector<8x128xf32> -> vector<8x128xf32>
    %5 = vector.broadcast %1 : vector<1x128xf32> to vector<8x128xf32>
    %6 = arith.addf %4, %5 : vector<8x128xf32>
    %7 = math.tanh %6 : vector<8x128xf32>
    %c0_7 = arith.constant 0 : index
    %c0_8 = arith.constant 0 : index
    %8 = vector.load %arg4[%c0_7, %c0_8] : memref<128x128xf32, #tpu.memory_space<vmem>>, vector<128x128xf32>
    %cst_9 = arith.constant dense<0.000000e+00> : vector<8x128xf32>
    %9 = tpu.matmul %7, %8, %cst_9 {dimension_numbers = #tpu.dot_dimension_numbers<[1], [0], [0], [1], [0, 0, 1, 1], [], []>} : vector<8x128xf32>, vector<128x128xf32>, vector<8x128xf32> -> vector<8x128xf32>
    %10 = vector.broadcast %2 : vector<1x128xf32> to vector<8x128xf32>
    %11 = arith.addf %9, %10 : vector<8x128xf32>
    %cst_10 = arith.constant dense<0xFF800000> : vector<8xf32>
    %12 = vector.multi_reduction <maximumf>, %11, %cst_10 [1] : vector<8x128xf32> to vector<8xf32>
    %13 = vector.shape_cast %12 : vector<8xf32> to vector<8x1xf32>
    %14 = vector.broadcast %13 : vector<8x1xf32> to vector<8x128xf32>
    %15 = arith.subf %11, %14 : vector<8x128xf32>
    %16 = math.exp %15 : vector<8x128xf32>
    %cst_11 = arith.constant dense<0.000000e+00> : vector<8xf32>
    %17 = vector.multi_reduction <add>, %16, %cst_11 [1] : vector<8x128xf32> to vector<8xf32>
    %18 = vector.shape_cast %17 : vector<8xf32> to vector<8x1xf32>
    %19 = vector.broadcast %18 : vector<8x1xf32> to vector<8x128xf32>
    %20 = arith.divf %16, %19 : vector<8x128xf32>
    %21 = vector.extract_strided_slice %20 {offsets = [0, 0], sizes = [8, 4], strides = [1, 1]} : vector<8x128xf32> to vector<8x4xf32>
    %c0_12 = arith.constant 0 : index
    %c0_13 = arith.constant 0 : index
    %22 = vector.load %arg6[%c0_12, %c0_13] : memref<8x4xf32, #tpu.memory_space<vmem>>, vector<8x4xf32>
    tpu.vector_store %arg6[%c0_12, %c0_13], %21 {strides = array<i32>} : memref<8x4xf32, #tpu.memory_space<vmem>>, vector<8x4xf32>,
    return
  }
  func.func @transform_0(%arg0: i32) -> (i32, i32) {
    %c0_i32 = arith.constant 0 : i32
    %c0_i32_0 = arith.constant 0 : i32
    return %arg0, %c0_i32 : i32, i32
  }
  func.func @transform_1(%arg0: i32) -> (i32, i32) {
    %c0_i32 = arith.constant 0 : i32
    %c0_i32_0 = arith.constant 0 : i32
    %c0_i32_1 = arith.constant 0 : i32
    return %c0_i32, %c0_i32_0 : i32, i32
  }
  func.func @transform_2(%arg0: i32) -> (i32, i32) {
    %c0_i32 = arith.constant 0 : i32
    %c0_i32_0 = arith.constant 0 : i32
    %c0_i32_1 = arith.constant 0 : i32
    return %c0_i32, %c0_i32_0 : i32, i32
  }
  func.func @transform_3(%arg0: i32) -> (i32, i32) {
    %c0_i32 = arith.constant 0 : i32
    %c0_i32_0 = arith.constant 0 : i32
    %c0_i32_1 = arith.constant 0 : i32
    return %c0_i32, %c0_i32_0 : i32, i32
  }
  func.func @transform_4(%arg0: i32) -> (i32, i32) {
    %c0_i32 = arith.constant 0 : i32
    %c0_i32_0 = arith.constant 0 : i32
    %c0_i32_1 = arith.constant 0 : i32
    return %c0_i32, %c0_i32_0 : i32, i32
  }
  func.func @transform_5(%arg0: i32) -> (i32, i32) {
    %c0_i32 = arith.constant 0 : i32
    %c0_i32_0 = arith.constant 0 : i32
    return %arg0, %c0_i32 : i32, i32
  }
}

</mosaic_0001>

<bundles_post_ra>
// kernel: tpu_custom_call.1
= control target key start
LH: loop header
LB: loop body
LE: loop exit
PB: predicated region body
PF: predicated region fallthrough
CT: control target
= control target key end

     0   :  { %10 = vsyncpa [#allocation3], 0  ;;  %s504_s0 = inlined_call_operand.hbm [shape: f32[8,8], index: 0, kind: input, shape index: {}]   ;;  %s505_s1 = inlined_call_operand.hbm [shape: f32[8,128], index: 1, kind: input, shape index: {}]   ;;  %s506_s2 = inlined_call_operand.vmem [shape: f32[1,128], index: 2, kind: input, shape index: {}]   ;;  %s507_s3 = inlined_call_operand.hbm [shape: f32[128,128], index: 3, kind: input, shape index: {}]   ;;  %s508_s4 = inlined_call_operand.vmem [shape: f32[1,128], index: 4, kind: input, shape index: {}]   ;;  %s509_s5 = inlined_call_operand.vmem [shape: f32[8,4], index: 5, kind: output, shape index: {}]  }
   0x1   :  { %11 = vsyncpa [#allocation5], 0  ;;  %s421_s18 = smov [#allocation4]   ;;  %s422_s20 = smov [#allocation2]  }
   0x2   :  { %s28_s19 = sshll.u32 %s421_s18, 4  ;;  %s18_s21 = sshll.u32 %s422_s20, 4  ;;  %s29_s19 = int_to_ptr.vmem [resolvable:$true] %s28_s19  ;;  %s19_s21 = int_to_ptr.vmem [resolvable:$true] %s18_s21 }
   0x3   :  { %s351_s24 = scalar_lea.hbm %s505_s1, 128 }
   0x4   :  { %p352_p0 = scmp.ne.s32.totalorder %s505_s1, %s351_s24  ;;  %p355_p1 = scmp.lt.u32.totalorder %s351_s24, %s505_s1 }
   0x6   :  { %p357_p2 = pnand %p355_p1, %p352_p0 }
   0x8   :  { %360 = shalt.err (!%p357_p2)
}
   0x9   :  { %s361_s29 = scalar_lea.vmem %s29_s19, 128  ;;  %p366_p4 = scmp.lt.s32.totalorder %s29_s19, %s29_s19 }
   0xa   :  { %p362_p3 = scmp.ne.s32.totalorder %s29_s19, %s361_s29  ;;  %p367_p5 = scmp.lt.s32.totalorder %s361_s29, %s361_s29 }
   0xc   :  { %p368_p6 = por %p367_p5, %p366_p4 }
   0xe   :  { %p369_p7 = pnand %p368_p6, %p362_p3 }
  0x10   :  { %372 = shalt.err (!%p369_p7)
}
  0x11   :  { %31 = dma.hbm_to_vmem [thread:$0]  %s505_s1, 128, %s29_s19, [#allocation5]  }
  0x12   :  { %s373_s9 = scalar_lea.hbm %s504_s0, 128 }
  0x13   :  { %p374_p8 = scmp.ne.s32.totalorder %s504_s0, %s373_s9  ;;  %p377_p9 = scmp.lt.u32.totalorder %s373_s9, %s504_s0 }
  0x15   :  { %p379_p10 = pnand %p377_p9, %p374_p8 }
  0x17   :  { %382 = shalt.err (!%p379_p10)
}
  0x18   :  { %s383_s14 = scalar_lea.vmem %s19_s21, 128  ;;  %p388_p12 = scmp.lt.s32.totalorder %s19_s21, %s19_s21 }
  0x19   :  { %p384_p11 = scmp.ne.s32.totalorder %s19_s21, %s383_s14  ;;  %p389_p13 = scmp.lt.s32.totalorder %s383_s14, %s383_s14 }
  0x1b   :  { %p390_p0 = por %p389_p13, %p388_p12 }
  0x1d   :  { %p391_p1 = pnand %p390_p0, %p384_p11 }
  0x1f   :  { %394 = shalt.err (!%p391_p1)
}
  0x20   :  { %21 = dma.hbm_to_vmem [thread:$0]  %s504_s0, 128, %s19_s21, [#allocation3]  }
  0x21   :  { %s423_s16 = smov [#allocation6]   ;;  %s395_s20 = scalar_lea.hbm %s507_s3, 2048 }
  0x22   :  { %s39_s17 = sshll.u32 %s423_s16, 4  ;;  %p396_p2 = scmp.ne.s32.totalorder %s507_s3, %s395_s20  ;;  %s40_s17 = int_to_ptr.vmem [resolvable:$true] %s39_s17 }
  0x23   :  { %p399_p3 = scmp.lt.u32.totalorder %s395_s20, %s507_s3 }
  0x25   :  { %p401_p4 = pnand %p399_p3, %p396_p2 }
  0x27   :  { %404 = shalt.err (!%p401_p4)
}
  0x28   :  { %s405_s26 = scalar_lea.vmem %s40_s17, 2048  ;;  %p410_p6 = scmp.lt.s32.totalorder %s40_s17, %s40_s17 }
  0x29   :  { %p406_p5 = scmp.ne.s32.totalorder %s40_s17, %s405_s26  ;;  %p411_p7 = scmp.lt.s32.totalorder %s405_s26, %s405_s26 }
  0x2b   :  { %p412_p8 = por %p411_p7, %p410_p6 }
  0x2d   :  { %p413_p9 = pnand %p412_p8, %p406_p5 }
  0x2f   :  { %416 = shalt.err (!%p413_p9)
}
  0x30   :  { %s424_s0 = smov 128   ;;  %s425_s21 = smov 8  }
  0x31   :  { %45 = dma.hbm_to_vmem [thread:$0]  %s507_s3, 2048, %s40_s17, [#allocation5], %s424_s0, %s424_s0, %s425_s21  }
  0x32   :  { %417 = dma.done.wait [#allocation3], 128  }
  0x33   :  { %418 = vsyncadd [#allocation3], 4294967168 }
  0x34   :  { %419 = dma.done.wait [#allocation5], 2176  }
  0x35   :  { %420 = vsyncadd [#allocation5], 4294965120  ;;  %v426_v0 = vmov 0.0   ;;  %vm427_vm0 = vmmov 0   ;;  %v428_v1 = vmov 0.0|0.0   ;;  %vm67_vm1 = vcmask 64512  }
  0x36   :  { %273 = vmatprep.subr.mxu0 %v426_v0  ;;  %275 = vmatprep.mubr.msk.f32.mxu0 %vm427_vm0, %v426_v0  ;;  %v60_v2 = vld [vmem:[#allocation4] sm:$0xff]  ;;  %v57_v3 = vld [vmem:[#allocation2] sm:$0xff]  ;;  %v142_v4 = vld [vmem:[#allocation6] sm:$0xff]  ;;  %vm243_vm2 = vcmask 31744  }
  0x37   :  { %313 = vmatprep.subr.bf16.mxu1 %v428_v1  ;;  %310 = vmatprep.mubr.msk.f32.mxu1 %vm427_vm0, %v426_v0  ;;  %v143_v5 = vld [vmem:[#allocation6 + $0x8] sm:$0xff]  ;;  %v144_v6 = vld [vmem:[#allocation6 + $0x10] sm:$0xff]  ;;  %v145_v7 = vld [vmem:[#allocation6 + $0x18] sm:$0xff] }
  0x38   :  { %274 = vmatpush3.msra.mxu0 %v60_v2  ;;  %v314_v8 = vpack.c.bf16 %v143_v5, %v142_v4  ;;  %v317_v9 = vpack.c.bf16 %v145_v7, %v144_v6  ;;  %v146_v10 = vld [vmem:[#allocation6 + $0x20] sm:$0xff]  ;;  %v147_v11 = vld [vmem:[#allocation6 + $0x28] sm:$0xff]  ;;  %v148_v13 = vld [vmem:[#allocation6 + $0x30] sm:$0xff] }
  0x39   :  { %276 = vmatmul.mubr.msk.f32.vlgmr.msra.gmra.mrb[0].mxu0 %vm67_vm1, %v57_v3  ;;  %v320_v12 = vpack.c.bf16 %v147_v11, %v146_v10  ;;  %v149_v14 = vld [vmem:[#allocation6 + $0x38] sm:$0xff]  ;;  %v150_v16 = vld [vmem:[#allocation6 + $0x40] sm:$0xff]  ;;  %v151_v17 = vld [vmem:[#allocation6 + $0x48] sm:$0xff] }
  0x3a   :  { %315 = vmatpush3.bf16.msra.mxu1 %v314_v8  ;;  %v323_v15 = vpack.c.bf16 %v149_v14, %v148_v13  ;;  %v326_v18 = vpack.c.bf16 %v151_v17, %v150_v16  ;;  %v152_v19 = vld [vmem:[#allocation6 + $0x50] sm:$0xff]  ;;  %v153_v20 = vld [vmem:[#allocation6 + $0x58] sm:$0xff]  ;;  %v154_v22 = vld [vmem:[#allocation6 + $0x60] sm:$0xff] }
  0x3b   :  { %316 = vmatprep.subr.bf16.mxu1 %v428_v1  ;;  %v329_v21 = vpack.c.bf16 %v153_v20, %v152_v19  ;;  %v155_v23 = vld [vmem:[#allocation6 + $0x68] sm:$0xff]  ;;  %v156_v25 = vld [vmem:[#allocation6 + $0x70] sm:$0xff]  ;;  %v157_v26 = vld [vmem:[#allocation6 + $0x78] sm:$0xff] }
  0x3c   :  { %v332_v24 = vpack.c.bf16 %v155_v23, %v154_v22  ;;  %v335_v27 = vpack.c.bf16 %v157_v26, %v156_v25  ;;  %v251_v28 = vld [vmem:[%s506_s2] ss:$0 sm:$0xff] }
  0x3d   :  { %v253_v33 = vld [vmem:[%s508_s4] ss:$0 sm:$0xff] }
  0x3e   :  { %318 = vmatpush3.bf16.msra.mxu1 %v317_v9 }
  0x3f   :  { %319 = vmatprep.subr.bf16.mxu1 %v428_v1 }
  0x42   :  { %321 = vmatpush3.bf16.msra.mxu1 %v320_v12 }
  0x43   :  { %322 = vmatprep.subr.bf16.mxu1 %v428_v1 }
  0x46   :  { %324 = vmatpush3.bf16.msra.mxu1 %v323_v15 }
  0x47   :  { %325 = vmatprep.subr.bf16.mxu1 %v428_v1 }
  0x4a   :  { %327 = vmatpush3.bf16.msra.mxu1 %v326_v18 }
  0x4b   :  { %328 = vmatprep.subr.bf16.mxu1 %v428_v1 }
  0x4e   :  { %330 = vmatpush3.bf16.msra.mxu1 %v329_v21 }
  0x4f   :  { %331 = vmatprep.subr.bf16.mxu1 %v428_v1 }
  0x52   :  { %333 = vmatpush3.bf16.msra.mxu1 %v332_v24 }
  0x53   :  { %334 = vmatprep.subr.bf16.mxu1 %v428_v1 }
  0x56   :  { %336 = vmatpush3.bf16.msra.mxu1 %v335_v27 }
 0x10c   :  { %v137_v29 = vpop.f32.mrb[0].mxu0 }
 0x10d   :  { %v138_v30 = vadd.f32 %v251_v28, %v137_v29  ;;  %v277_v31 = vpop.f32.mrb[1].mxu0 }
 0x10f   :  { %345 = vtanh.f32 %v138_v30 }
 0x119   :  { %v346_v32 = vpop.eup %345 }
 0x11a   :  { %311 = vmatmul.mubr.f32.vlgmr.msra.gmra.mrb[0].mxu1 %v346_v32 }
 0x1ed   :  { %v230_v34 = vpop.f32.mrb[0].mxu1 }
 0x1ee   :  { %v231_v35 = vadd.f32 %v253_v33, %v230_v34  ;;  %v312_v36 = vpop.f32.mrb[1].mxu1 }
 0x1f0   :  { %234 = vmax.xlane.f32.xlu0 %v231_v35 }
 0x27d   :  { %v235_v37 = vpop.xlane.xlu0 %234 }
 0x27e   :  { %v236_v38 = vsub.f32 %v231_v35, %v235_v37 }
 0x280   :  { %v237_v39 = vmul.f32 1.442695, %v236_v38 }
 0x282   :  { %347 = vpow2.f32 %v237_v39 }
 0x28c   :  { %v348_v40 = vpop.eup %347 }
 0x28d   :  { %239 = vadd.xlane.f32.xlu0 %v348_v40 }
 0x31a   :  { %v240_v41 = vpop.xlane.xlu0 %239 }
 0x31b   :  { %349 = vrcp.f32 %v240_v41 }
 0x325   :  { %v350_v42 = vpop.eup %349 }
 0x326   :  { %v242_v43 = vmul.f32 %v350_v42, %v348_v40 }
 0x328   :  { %244 = vst.msk [vmem:[%s509_s5] sm:$0xff] %vm243_vm2, %v242_v43 }
 0x329   :  { %249 = vsyncpa [#allocation3], 1 }
 0x32a   :  { %250 = vsyncpa [#allocation5], 1 }

</bundles_post_ra>
